<compile_context>
chip_gen: v5e
topology: v5e:2x2
jax: 0.10.0
libtpu: 0.0.40
codegen_flags: <defaults>
</compile_context>

<pallas_src>
import functools

import jax
import jax.numpy as jnp
from jax.experimental import pallas as pl
from jax.experimental.pallas import tpu as pltpu


def _activate(x, activation):
    if activation == "relu":
        return jnp.maximum(x, 0.0)
    if activation == "gelu":
        # PyTorch nn.GELU default is the exact (erf) formulation.
        return jax.nn.gelu(x, approximate=False)
    if activation == "silu":
        return x * jax.nn.sigmoid(x)
    if activation == "mish":
        return x * jnp.tanh(jax.nn.softplus(x))
    raise ValueError("Choose activation correctly ....")


def block_kernel(xp_ref, t_ref, b_ref, out_ref, *, H, KH, activation):
    # xp_ref : (Hp, Kpad)            padded input for one batch item (lane-dense)
    # t_ref  : (KH*Kpad, W*Cout)     block-Toeplitz weights, W-parity-permuted cols
    # b_ref  : (1, W*Cout)           bias tiled over W
    # out_ref: (H//2, (W//2)*Cout)   pooled output (lane-dense)
    Hh = H // 2
    half = out_ref.shape[-1]  # (W//2) * Cout

    def conv_rows(parity):
        # Gather the KH kh-shifted slabs of the even/odd output rows with
        # sublane-strided ref loads, lane-concat them (128-aligned pieces),
        # and run a single fused matmul over K = KH*Kpad.
        slabs = [xp_ref[pl.ds(parity + kh, Hh, 2), :] for kh in range(KH)]
        s = jnp.concatenate(slabs, axis=-1)                      # (H/2, KH*Kpad)
        y = jnp.dot(s, t_ref[...], preferred_element_type=jnp.float32)
        return _activate(y + b_ref[...], activation)             # (H/2, W*Cout)

    # MaxPool along H: even vs odd conv rows (pure VPU max, no relayout).
    yh = jnp.maximum(conv_rows(0), conv_rows(1))                 # (H/2, W*Cout)
    # MaxPool along W: even-w columns live in lanes [0, half), odd-w columns in
    # [half, 2*half) (baked into T's column order) -> single lane-half max.
    out_ref[...] = jnp.maximum(yh[:, :half], yh[:, half:]).astype(out_ref.dtype)


def block_forward(x_nchw, w_oihw, bias, activation="silu"):
    """Forward pass of Block. x_nchw: (B, Cin, H, W) like PyTorch."""
    B, Cin, H, W = x_nchw.shape
    Cout, Cin2, KH, KW = w_oihw.shape
    assert Cin2 == Cin
    assert KH % 2 == 1 and KW % 2 == 1, "only odd kernels ('same' symmetric pad)"
    assert H % 2 == 0 and W % 2 == 0, "maxpool(2,2) assumes even spatial dims"

    ph, pw = (KH - 1) // 2, (KW - 1) // 2
    Hp, Wp = H + 2 * ph, W + 2 * pw
    LANE = 128
    Kpad = -(-(Wp * Cin) // LANE) * LANE          # lane-dense row width

    # ---- wrapper-side layout plumbing (XLA) ----
    # Input: NCHW -> NHWC, spatially pad, flatten (W,Cin) into lanes, pad to 128.
    x = jnp.transpose(x_nchw, (0, 2, 3, 1)).astype(jnp.float32)          # NHWC
    xp = jnp.pad(x, ((0, 0), (ph, ph), (pw, pw), (0, 0)))
    xp = xp.reshape(B, Hp, Wp * Cin)
    xp = jnp.pad(xp, ((0, 0), (0, 0), (0, Kpad - Wp * Cin)))             # (B,Hp,Kpad)

    # Weights -> block-Toeplitz matrix T[(kh,wp,cin), (w,cout)], with the W axis
    # permuted parity-major (all even w first, then all odd w) so the in-kernel
    # W-pool is a contiguous lane-half max.
    w_k = jnp.transpose(w_oihw, (2, 3, 1, 0)).astype(jnp.float32)        # (KH,KW,Cin,Cout)
    sel = (jnp.arange(Wp)[None, :, None]
           == jnp.arange(W)[None, None, :] + jnp.arange(KW)[:, None, None]
           ).astype(jnp.float32)                                         # (KW,Wp,W)
    t5 = jnp.einsum("kqio,qpw->kpiwo", w_k, sel)                         # (KH,Wp,Cin,W,Cout)
    w_perm = jnp.concatenate([jnp.arange(0, W, 2), jnp.arange(1, W, 2)])
    t5 = t5[:, :, :, w_perm, :]
    t = t5.reshape(KH, Wp * Cin, W * Cout)
    t = jnp.pad(t, ((0, 0), (0, Kpad - Wp * Cin), (0, 0)))
    t = t.reshape(KH * Kpad, W * Cout)                                   # (KH*Kpad, W*Cout)

    b_row = jnp.tile(bias.astype(jnp.float32), W).reshape(1, W * Cout)   # (1, W*Cout)

    Hh, half = H // 2, (W // 2) * Cout

    # TODO(synk): for ImageNet-scale H,W/Cin add spatial tiling with a halo
    # (and bf16 matmul inputs) instead of one full-image block per batch item.
    out = pl.pallas_call(
        functools.partial(block_kernel, H=H, KH=KH, activation=activation),
        out_shape=jax.ShapeDtypeStruct((B, Hh, half), jnp.float32),
        grid_spec=pltpu.PrefetchScalarGridSpec(
            num_scalar_prefetch=0,
            grid=(B,),
            in_specs=[
                pl.BlockSpec((None, Hp, Kpad), lambda b: (b, 0, 0)),
                pl.BlockSpec((KH * Kpad, W * Cout), lambda b: (0, 0)),
                pl.BlockSpec((1, W * Cout), lambda b: (0, 0)),
            ],
            out_specs=pl.BlockSpec((None, Hh, half), lambda b: (b, 0, 0)),
        ),
        compiler_params=pltpu.CompilerParams(
            dimension_semantics=("parallel",)),   # both TCs on v7x; no-op on v5e/v6e
    )(xp, t, b_row)

    # (B, H/2, (W/2)*Cout) -> (B, Cout, H/2, W/2)  (NCHW, like PyTorch)
    out = out.reshape(B, Hh, W // 2, Cout)
    return jnp.transpose(out, (0, 3, 1, 2))


def _reference(x_nchw, w_oihw, bias, activation):
    """Pure-JAX reference (NCHW, mirrors PyTorch)."""
    y = jax.lax.conv_general_dilated(
        x_nchw.astype(jnp.float32), w_oihw.astype(jnp.float32),
        window_strides=(1, 1), padding="SAME",
        dimension_numbers=("NCHW", "OIHW", "NCHW"))
    y = y + bias.reshape(1, -1, 1, 1)
    y = _activate(y, activation)
    y = jax.lax.reduce_window(y, -jnp.inf, jax.lax.max,
                              window_dimensions=(1, 1, 2, 2),
                              window_strides=(1, 1, 2, 2),
                              padding="VALID")
    return y


if __name__ == "__main__":
    # Module config: Block(in_channels=4, out_channels=8, kernel_size=3, 'silu')
    B, Cin, Cout, H, W, K = 2, 4, 8, 16, 16, 3
    activation = "silu"

    key = jax.random.PRNGKey(0)
    kx, kw, kb = jax.random.split(key, 3)

    x = jax.random.normal(kx, (B, Cin, H, W), dtype=jnp.float32)
    # Deterministic Conv2d-style init (uniform in +/- 1/sqrt(fan_in)).
    bound = 1.0 / (Cin * K * K) ** 0.5
    w = jax.random.uniform(kw, (Cout, Cin, K, K), jnp.float32, -bound, bound)
    b = jax.random.uniform(kb, (Cout,), jnp.float32, -bound, bound)

    out = block_forward(x, w, b, activation=activation)
    out = jax.block_until_ready(out)

    ref = jax.block_until_ready(_reference(x, w, b, activation))
    assert out.shape == (B, Cout, H // 2, W // 2), out.shape
    assert jnp.allclose(out, ref, atol=1e-4, rtol=1e-4), (
        float(jnp.max(jnp.abs(out - ref))))

    print("KERNEL_OK")
</pallas_src>

<mosaic_0001>
module attributes {stable_mosaic.version = 11 : i64} {
  func.func @block_kernel(%arg0: i32, %arg1: memref<1x18x128xf32, #tpu.memory_space<vmem>>, %arg2: memref<384x128xf32, #tpu.memory_space<vmem>>, %arg3: memref<1x128xf32, #tpu.memory_space<vmem>>, %arg4: memref<1x8x64xf32, #tpu.memory_space<vmem>>) attributes {dimension_semantics = [#tpu.dimension_semantics<parallel>], iteration_bounds = array<i64: 2>, scalar_prefetch = 0 : i64, scratch_operands = 0 : i64, tpu.core_type = #tpu.core_type<tc>, window_params = [{transform_indices = @transform_0, window_bounds = array<i64: 1, 18, 128>}, {pipeline_mode = #tpu.pipeline_mode<synchronous>, transform_indices = @transform_1, window_bounds = array<i64: 384, 128>}, {pipeline_mode = #tpu.pipeline_mode<synchronous>, transform_indices = @transform_2, window_bounds = array<i64: 1, 128>}, {transform_indices = @transform_3, window_bounds = array<i64: 1, 8, 64>}]} {
    %c0 = arith.constant 0 : index
    %c0_0 = arith.constant 0 : index
    %c0_1 = arith.constant 0 : index
    %0 = tpu.strided_load %arg1[%c0, %c0_0, %c0_1] {strides = array<i32: 1, 2, 1>} : memref<1x18x128xf32, #tpu.memory_space<vmem>>, vector<1x8x128xf32>
    %1 = vector.shape_cast %0 : vector<1x8x128xf32> to vector<8x128xf32>
    %c0_2 = arith.constant 0 : index
    %c1 = arith.constant 1 : index
    %c0_3 = arith.constant 0 : index
    %2 = tpu.strided_load %arg1[%c0_2, %c1, %c0_3] {strides = array<i32: 1, 2, 1>} : memref<1x18x128xf32, #tpu.memory_space<vmem>>, vector<1x8x128xf32>
    %3 = vector.shape_cast %2 : vector<1x8x128xf32> to vector<8x128xf32>
    %c0_4 = arith.constant 0 : index
    %c2 = arith.constant 2 : index
    %c0_5 = arith.constant 0 : index
    %4 = tpu.strided_load %arg1[%c0_4, %c2, %c0_5] {strides = array<i32: 1, 2, 1>} : memref<1x18x128xf32, #tpu.memory_space<vmem>>, vector<1x8x128xf32>
    %5 = vector.shape_cast %4 : vector<1x8x128xf32> to vector<8x128xf32>
    %6 = tpu.concatenate %1, %3, %5 in 1 : vector<8x128xf32>, vector<8x128xf32>, vector<8x128xf32> -> vector<8x384xf32>
    %c0_6 = arith.constant 0 : index
    %c0_7 = arith.constant 0 : index
    %7 = vector.load %arg2[%c0_6, %c0_7] : memref<384x128xf32, #tpu.memory_space<vmem>>, vector<384x128xf32>
    %cst = arith.constant dense<0.000000e+00> : vector<8x128xf32>
    %8 = tpu.matmul %6, %7, %cst {dimension_numbers = #tpu.dot_dimension_numbers<[1], [0], [0], [1], [0, 0, 1, 1], [], []>} : vector<8x384xf32>, vector<384x128xf32>, vector<8x128xf32> -> vector<8x128xf32>
    %c0_8 = arith.constant 0 : index
    %c0_9 = arith.constant 0 : index
    %9 = vector.load %arg3[%c0_8, %c0_9] : memref<1x128xf32, #tpu.memory_space<vmem>>, vector<1x128xf32>
    %10 = vector.broadcast %9 : vector<1x128xf32> to vector<8x128xf32>
    %11 = arith.addf %8, %10 : vector<8x128xf32>
    %12 = arith.negf %11 : vector<8x128xf32>
    %13 = math.exp %12 : vector<8x128xf32>
    %cst_10 = arith.constant 1.000000e+00 : f32
    %14 = vector.broadcast %cst_10 : f32 to vector<8x128xf32>
    %15 = arith.addf %14, %13 : vector<8x128xf32>
    %16 = arith.divf %14, %15 : vector<8x128xf32>
    %17 = arith.mulf %11, %16 : vector<8x128xf32>
    %c0_11 = arith.constant 0 : index
    %c1_12 = arith.constant 1 : index
    %c0_13 = arith.constant 0 : index
    %18 = tpu.strided_load %arg1[%c0_11, %c1_12, %c0_13] {strides = array<i32: 1, 2, 1>} : memref<1x18x128xf32, #tpu.memory_space<vmem>>, vector<1x8x128xf32>
    %19 = vector.shape_cast %18 : vector<1x8x128xf32> to vector<8x128xf32>
    %c0_14 = arith.constant 0 : index
    %c2_15 = arith.constant 2 : index
    %c0_16 = arith.constant 0 : index
    %20 = tpu.strided_load %arg1[%c0_14, %c2_15, %c0_16] {strides = array<i32: 1, 2, 1>} : memref<1x18x128xf32, #tpu.memory_space<vmem>>, vector<1x8x128xf32>
    %21 = vector.shape_cast %20 : vector<1x8x128xf32> to vector<8x128xf32>
    %c0_17 = arith.constant 0 : index
    %c3 = arith.constant 3 : index
    %c0_18 = arith.constant 0 : index
    %22 = tpu.strided_load %arg1[%c0_17, %c3, %c0_18] {strides = array<i32: 1, 2, 1>} : memref<1x18x128xf32, #tpu.memory_space<vmem>>, vector<1x8x128xf32>
    %23 = vector.shape_cast %22 : vector<1x8x128xf32> to vector<8x128xf32>
    %24 = tpu.concatenate %19, %21, %23 in 1 : vector<8x128xf32>, vector<8x128xf32>, vector<8x128xf32> -> vector<8x384xf32>
    %c0_19 = arith.constant 0 : index
    %c0_20 = arith.constant 0 : index
    %25 = vector.load %arg2[%c0_19, %c0_20] : memref<384x128xf32, #tpu.memory_space<vmem>>, vector<384x128xf32>
    %cst_21 = arith.constant dense<0.000000e+00> : vector<8x128xf32>
    %26 = tpu.matmul %24, %25, %cst_21 {dimension_numbers = #tpu.dot_dimension_numbers<[1], [0], [0], [1], [0, 0, 1, 1], [], []>} : vector<8x384xf32>, vector<384x128xf32>, vector<8x128xf32> -> vector<8x128xf32>
    %c0_22 = arith.constant 0 : index
    %c0_23 = arith.constant 0 : index
    %27 = vector.load %arg3[%c0_22, %c0_23] : memref<1x128xf32, #tpu.memory_space<vmem>>, vector<1x128xf32>
    %28 = vector.broadcast %27 : vector<1x128xf32> to vector<8x128xf32>
    %29 = arith.addf %26, %28 : vector<8x128xf32>
    %30 = arith.negf %29 : vector<8x128xf32>
    %31 = math.exp %30 : vector<8x128xf32>
    %cst_24 = arith.constant 1.000000e+00 : f32
    %32 = vector.broadcast %cst_24 : f32 to vector<8x128xf32>
    %33 = arith.addf %32, %31 : vector<8x128xf32>
    %34 = arith.divf %32, %33 : vector<8x128xf32>
    %35 = arith.mulf %29, %34 : vector<8x128xf32>
    %36 = arith.maximumf %17, %35 : vector<8x128xf32>
    %37 = vector.extract_strided_slice %36 {offsets = [0, 0], sizes = [8, 64], strides = [1, 1]} : vector<8x128xf32> to vector<8x64xf32>
    %38 = vector.extract_strided_slice %36 {offsets = [0, 64], sizes = [8, 64], strides = [1, 1]} : vector<8x128xf32> to vector<8x64xf32>
    %39 = arith.maximumf %37, %38 : vector<8x64xf32>
    %c0_25 = arith.constant 0 : index
    %c0_26 = arith.constant 0 : index
    %c0_27 = arith.constant 0 : index
    %40 = vector.load %arg4[%c0_25, %c0_26, %c0_27] : memref<1x8x64xf32, #tpu.memory_space<vmem>>, vector<1x8x64xf32>
    %41 = vector.shape_cast %40 : vector<1x8x64xf32> to vector<8x64xf32>
    %42 = vector.shape_cast %39 : vector<8x64xf32> to vector<1x8x64xf32>
    tpu.vector_store %arg4[%c0_25, %c0_26, %c0_27], %42 {strides = array<i32>} : memref<1x8x64xf32, #tpu.memory_space<vmem>>, vector<1x8x64xf32>,
    return
  }
  func.func @transform_0(%arg0: i32) -> (i32, i32, i32) {
    %c0_i32 = arith.constant 0 : i32
    %c0_i32_0 = arith.constant 0 : i32
    %c0_i32_1 = arith.constant 0 : i32
    return %arg0, %c0_i32, %c0_i32_0 : i32, i32, i32
  }
  func.func @transform_1(%arg0: i32) -> (i32, i32) {
    %c0_i32 = arith.constant 0 : i32
    %c0_i32_0 = arith.constant 0 : i32
    %c0_i32_1 = arith.constant 0 : i32
    return %c0_i32, %c0_i32_0 : i32, i32
  }
  func.func @transform_2(%arg0: i32) -> (i32, i32) {
    %c0_i32 = arith.constant 0 : i32
    %c0_i32_0 = arith.constant 0 : i32
    %c0_i32_1 = arith.constant 0 : i32
    return %c0_i32, %c0_i32_0 : i32, i32
  }
  func.func @transform_3(%arg0: i32) -> (i32, i32, i32) {
    %c0_i32 = arith.constant 0 : i32
    %c0_i32_0 = arith.constant 0 : i32
    %c0_i32_1 = arith.constant 0 : i32
    return %arg0, %c0_i32, %c0_i32_0 : i32, i32, i32
  }
}

</mosaic_0001>

<bundles_post_ra>
// kernel: tpu_custom_call.1
= control target key start
LH: loop header
LB: loop body
LE: loop exit
PB: predicated region body
PF: predicated region fallthrough
CT: control target
= control target key end

     0   :  { %8 = vsyncpa [#allocation3], 0  ;;  %s911_s0 = inlined_call_operand.vmem [shape: f32[2,18,128], index: 0, kind: input, shape index: {}]   ;;  %s912_s1 = inlined_call_operand.hbm [shape: f32[384,128], index: 1, kind: input, shape index: {}]   ;;  %s913_s2 = inlined_call_operand.vmem [shape: f32[1,128], index: 2, kind: input, shape index: {}]   ;;  %s914_s3 = inlined_call_operand.hbm [shape: f32[2,8,64], index: 3, kind: output, shape index: {}]  }
   0x1   :  { %9 = vsyncpa [#allocation4], 0 }
   0x2   :  { %11 = vsyncpa [#allocation4 + $0x1], 0  ;;  %s702_s12 = smov 0   ;;  %s704_s13 = smov 0  }
   0x3   :  { %s706_s14 = smov 0   ;;  %s708_s15 = smov 0  }
   0x4 LB: > { %s723_s16 = sadd.s32 4294967295, %s676_s15   ;;  %s500_s17 = sadd.s32 4294967294, %s676_s15   ;;  %s676_s15 = sphi %s708_s15, %s920_s15   ;;  %s672_s14 = sphi %s706_s14, %s919_s14   ;;  %s668_s13 = sphi %s704_s13, %s918_s13   ;;  %s664_s12 = sphi %s702_s12, %s917_s12  }
   0x5   : > { %s727_s18 = sadd.s32 1, %s676_s15   ;;  %s92_s19 = sadd.s32 1, %s672_s14 }
   0x6   : > { %s89_s20 = ssub.s32 %s676_s15, %s727_s18  ;;  %p102_p0 = scmp.ne.s32.totalorder %s672_s14, %s668_s13 }
   0x7   : > { %p90_p1 = scmp.eq.s32.totalorder %s89_s20, 0  ;;  %p103_p2 = scmp.eq.s32.totalorder %s723_s16, 1 }
   0x8   : > { %p108_p3 = scmp.ne.s32.totalorder %s668_s13, %s664_s12  ;;  %p109_p4 = scmp.eq.s32.totalorder %s500_s17, 1 }
   0x9   : > { %s738_s21 = scalar_select %p90_p1, %s672_s14, %s92_s19  }
   0xa   : > { %p740_p5 = por %p103_p2, %p102_p0  ;;  %p744_p6 = por %p109_p4, %p108_p3 }
   0xb   : > { %p501_p7 = scmp.ge.s32.totalorder %s676_s15, 1  ;;  %p116_p8 = scmp.lt.s32.totalorder %s676_s15, 3 }
   0xc   : > { %p532_p9 = scmp.eq.s32.totalorder %s723_s16, 0  ;;  %s127_s26 = sshll.u32 %s912_s1, 4  ;;  %s128_s26 = int_to_ptr.hbm [resolvable:$true] %s127_s26 }
   0xd   : > { %p117_p10 = pnand %p501_p7, %p116_p8  ;;  %s678_s27 = smov [#allocation2]  }
   0xe   : > { %s129_s28 = sshll.u32 %s678_s27, 4  ;;  %s679_s29 = smov 128   ;;  %s130_s28 = int_to_ptr.vmem [resolvable:$true] %s129_s28 }
   0xf   : > { %p524_p11 = pneg %p117_p10  ;;  %s680_s30 = smov 8  }
  0x10   : > { %156 = sbr.rel (%p117_p10) target bundleno = 369 (0x171), region = 32 }
  0x11   : > { %p525_p12 = pnand %p532_p9, %p524_p11 }
  0x13   : > { %527 = dma.hbm_to_vmem [thread:$0]  (!%p525_p12), %s128_s26, 6144, %s130_s28, [#allocation3], %s679_s29, %s679_s29, %s680_s30  }
  0x15   : > { %655 = dma.done.wait (%p532_p9), [#allocation3], 6144  }
  0x16   : > { %657 = vsyncadd (%p532_p9), [#allocation3], 4294961152  ;;  %v206_v0 = vld [vmem:[#allocation2 + $0x78] sm:$0xff]  ;;  %v205_v2 = vld [vmem:[#allocation2 + $0x70] sm:$0xff]  ;;  %p181_p13 = scmp.lt.s32.totalorder %s723_s16, 1  ;;  %s681_s11 = smov 64  }
  0x17   : > { %v760_v1 = vld [vmem:[#allocation2 + $0x178] sm:$0xff]  ;;  %243 = vmatpush.msra.mxu0 %v206_v0  ;;  %v765_v4 = vld [vmem:[#allocation2 + $0x170] sm:$0xff]  ;;  %v204_v5 = vld [vmem:[#allocation2 + $0x68] sm:$0xff]  ;;  %325 = vmatpush.msra.mxu3 %v206_v0  ;;  %s178_s17 = sand.u32 1, %s668_s13   ;;  %s514_s20 = sshll.u32 %s723_s16, 3  ;;  %vm411_vm8 = vcmask 523264  }
  0x18   : > { %283 = vmatpush.msra.mxu2 %v760_v1  ;;  %v763_v3 = vld [vmem:[#allocation2 + $0xf8] sm:$0xff]  ;;  %v768_v6 = vld [vmem:[#allocation2 + $0xf0] sm:$0xff]  ;;  %v770_v7 = vld [vmem:[#allocation2 + $0x168] sm:$0xff]  ;;  %s824_s4 = scalar_select %p181_p13, %s723_s16, 1 }
  0x19   : > { %263 = vmatpush.msra.mxu1 %v763_v3  ;;  %244 = vmatpush.msra.mxu0 %v205_v2  ;;  %v773_v8 = vld [vmem:[#allocation2 + $0xe8] sm:$0xff]  ;;  %v203_v9 = vld [vmem:[#allocation2 + $0x60] sm:$0xff]  ;;  %v202_v12 = vld [vmem:[#allocation2 + $0x58] sm:$0xff]  ;;  %s506_s19 = sshll.u32 %s178_s17, 3  ;;  %s424_s26 = scalar_lea.hbm %s914_s3, %s514_s20 }
  0x1a   : > { %284 = vmatpush.msra.mxu2 %v765_v4  ;;  %v776_v10 = vld [vmem:[#allocation2 + $0x160] sm:$0xff]  ;;  %326 = vmatpush.msra.mxu3 %v205_v2  ;;  %v782_v13 = vld [vmem:[#allocation2 + $0x158] sm:$0xff]  ;;  %v201_v15 = vld [vmem:[#allocation2 + $0x50] sm:$0xff]  ;;  %s517_s5 = smul.u32 24, %s824_s4  ;;  %s180_s27 = scalar_lea.vmem [#allocation5], %s506_s19 }
  0x1b   : > { %264 = vmatpush.msra.mxu1 %v768_v6  ;;  %245 = vmatpush.msra.mxu0 %v204_v5  ;;  %v779_v11 = vld [vmem:[#allocation2 + $0xe0] sm:$0xff]  ;;  %v785_v14 = vld [vmem:[#allocation2 + $0xd8] sm:$0xff]  ;;  %v788_v16 = vld [vmem:[#allocation2 + $0x150] sm:$0xff]  ;;  %s426_s28 = sshll.u32 %s180_s27, 4  ;;  %s428_s29 = sshll.u32 %s424_s26, 4  ;;  %s427_s28 = int_to_ptr.vmem [resolvable:$true] %s426_s28  ;;  %s429_s29 = int_to_ptr.hbm [resolvable:$true] %s428_s29 }
  0x1c   : > { %285 = vmatpush.msra.mxu2 %v770_v7  ;;  %327 = vmatpush.msra.mxu3 %v204_v5  ;;  %v791_v17 = vld [vmem:[#allocation2 + $0xd0] sm:$0xff]  ;;  %v200_v18 = vld [vmem:[#allocation2 + $0x48] sm:$0xff]  ;;  %v199_v21 = vld [vmem:[#allocation2 + $0x40] sm:$0xff]  ;;  %s845_s8 = scalar_lea.vmem %s911_s0, %s517_s5  ;;  %s414_s30 = scalar_lea.sflag [#allocation4], %s178_s17 }
  0x1d   : > { %265 = vmatpush.msra.mxu1 %v773_v8  ;;  %246 = vmatpush.msra.mxu0 %v203_v9  ;;  %v794_v19 = vld [vmem:[#allocation2 + $0x148] sm:$0xff]  ;;  %v800_v22 = vld [vmem:[#allocation2 + $0x140] sm:$0xff]  ;;  %v198_v24 = vld [vmem:[#allocation2 + $0x38] sm:$0xff]  ;;  %s624_s4 = sshra.s32 %s429_s29, 4  ;;  %s630_s7 = scalar_lea.hbm %s914_s3, 16  ;;  %s625_s4 = int_to_ptr.hbm [resolvable:$true] %s624_s4 }
  0x1e   : > { %286 = vmatpush.msra.mxu2 %v776_v10  ;;  %328 = vmatpush.msra.mxu3 %v203_v9  ;;  %v797_v20 = vld [vmem:[#allocation2 + $0xc8] sm:$0xff]  ;;  %v803_v23 = vld [vmem:[#allocation2 + $0xc0] sm:$0xff]  ;;  %v806_v25 = vld [vmem:[#allocation2 + $0x138] sm:$0xff]  ;;  %s626_s5 = scalar_lea.hbm %s625_s4, 8  ;;  %p631_p3 = scmp.lt.s32.totalorder %s625_s4, %s914_s3 }
  0x1f   : > { %266 = vmatpush.msra.mxu1 %v779_v11  ;;  %247 = vmatpush.msra.mxu0 %v202_v12  ;;  %v810_v26 = vld [vmem:[#allocation2 + $0xb8] sm:$0xff]  ;;  %v197_v27 = vld [vmem:[#allocation2 + $0x30] sm:$0xff]  ;;  %v196_v30 = vld [vmem:[#allocation2 + $0x28] sm:$0xff]  ;;  %p627_p0 = scmp.ne.s32.totalorder %s625_s4, %s626_s5  ;;  %p632_p4 = scmp.lt.s32.totalorder %s630_s7, %s626_s5 }
  0x20   : > { %287 = vmatpush.msra.mxu2 %v782_v13  ;;  %329 = vmatpush.msra.mxu3 %v202_v12  ;;  %v813_v28 = vld [vmem:[#allocation2 + $0x130] sm:$0xff]  ;;  %v819_v31 = vld [vmem:[#allocation2 + $0x128] sm:$0xff]  ;;  %v195_v33 = vld [vmem:[#allocation2 + $0x20] sm:$0xff] }
  0x21   : > { %267 = vmatpush.msra.mxu1 %v785_v14  ;;  %248 = vmatpush.msra.mxu0 %v201_v15  ;;  %v816_v29 = vld [vmem:[#allocation2 + $0xb0] sm:$0xff]  ;;  %v827_v32 = vld [vmem:[#allocation2 + $0xa8] sm:$0xff]  ;;  %v830_v34 = vld [vmem:[#allocation2 + $0x120] sm:$0xff]  ;;  %p628_p1 = pnand %p627_p0, %p740_p5  ;;  %p633_p7 = por %p632_p4, %p631_p3 }
  0x22   : > { %288 = vmatpush.msra.mxu2 %v788_v16  ;;  %330 = vmatpush.msra.mxu3 %v201_v15  ;;  %v833_v35 = vld [vmem:[#allocation2 + $0xa0] sm:$0xff]  ;;  %v194_v36 = vld [vmem:[#allocation2 + $0x18] sm:$0xff]  ;;  %v193_v39 = vld [vmem:[#allocation2 + $0x10] sm:$0xff] }
  0x23   : > { %268 = vmatpush.msra.mxu1 %v791_v17  ;;  %249 = vmatpush.msra.mxu0 %v200_v18  ;;  %v836_v37 = vld [vmem:[#allocation2 + $0x118] sm:$0xff]  ;;  %v225_v40 = vld [vmem:[#allocation2 + $0x110] sm:$0xff]  ;;  %v192_v42 = vld [vmem:[#allocation2 + $0x8] sm:$0xff]  ;;  %p629_p2 = pneg %p628_p1 }
  0x24   : > { %289 = vmatpush.msra.mxu2 %v794_v19  ;;  %331 = vmatpush.msra.mxu3 %v200_v18  ;;  %v210_v38 = vld [vmem:[#allocation2 + $0x98] sm:$0xff]  ;;  %v209_v41 = vld [vmem:[#allocation2 + $0x90] sm:$0xff]  ;;  %v224_v43 = vld [vmem:[#allocation2 + $0x108] sm:$0xff] }
  0x25   : > { %269 = vmatpush.msra.mxu1 %v797_v20  ;;  %250 = vmatpush.msra.mxu0 %v199_v21  ;;  %v208_v44 = vld [vmem:[#allocation2 + $0x88] sm:$0xff]  ;;  %v191_v45 = vld [vmem:[#allocation2] sm:$0xff]  ;;  %p634_p8 = pnand %p633_p7, %p629_p2 }
  0x26   : > { %290 = vmatpush.msra.mxu2 %v800_v22  ;;  %332 = vmatpush.msra.mxu3 %v199_v21  ;;  %v223_v46 = vld [vmem:[#allocation2 + $0x100] sm:$0xff] }
  0x27   : > { %270 = vmatpush.msra.mxu1 %v803_v23  ;;  %251 = vmatpush.msra.mxu0 %v198_v24  ;;  %v509_v47 = vld [vmem:[%s845_s8 + $0x2] ss:$2 sm:$0xff]  ;;  %v508_v50 = vld [vmem:[%s845_s8 + $0x1] ss:$2 sm:$0xff]  ;;  %v571_v52 = vld [vmem:[%s913_s2] ss:$0 sm:$0xff] }
  0x28   : > { %291 = vmatpush.msra.mxu2 %v806_v25  ;;  %333 = vmatpush.msra.mxu3 %v198_v24  ;;  %v207_v48 = vld [vmem:[#allocation2 + $0x80] sm:$0xff] }
  0x29   : > { %271 = vmatpush.msra.mxu1 %v810_v26  ;;  %252 = vmatpush.msra.mxu0 %v197_v27  ;;  %v186_v49 = vld [vmem:[%s845_s8] ss:$2 sm:$0xff]  ;;  %v511_v51 = vld [vmem:[%s845_s8 + $0x3] ss:$2 sm:$0xff] }
  0x2a   : > { %292 = vmatpush.msra.mxu2 %v813_v28  ;;  %334 = vmatpush.msra.mxu3 %v197_v27 }
  0x2b   : > { %272 = vmatpush.msra.mxu1 %v816_v29  ;;  %253 = vmatpush.msra.mxu0 %v196_v30 }
  0x2c   : > { %293 = vmatpush.msra.mxu2 %v819_v31  ;;  %335 = vmatpush.msra.mxu3 %v196_v30 }
  0x2d   : > { %273 = vmatpush.msra.mxu1 %v827_v32  ;;  %254 = vmatpush.msra.mxu0 %v195_v33 }
  0x2e   : > { %294 = vmatpush.msra.mxu2 %v830_v34  ;;  %336 = vmatpush.msra.mxu3 %v195_v33 }
  0x2f   : > { %274 = vmatpush.msra.mxu1 %v833_v35  ;;  %255 = vmatpush.msra.mxu0 %v194_v36 }
  0x30   : > { %295 = vmatpush.msra.mxu2 %v836_v37  ;;  %337 = vmatpush.msra.mxu3 %v194_v36 }
  0x31   : > { %275 = vmatpush.msra.mxu1 %v210_v38  ;;  %256 = vmatpush.msra.mxu0 %v193_v39 }
  0x32   : > { %296 = vmatpush.msra.mxu2 %v225_v40  ;;  %338 = vmatpush.msra.mxu3 %v193_v39 }
  0x33   : > { %276 = vmatpush.msra.mxu1 %v209_v41  ;;  %257 = vmatpush.msra.mxu0 %v192_v42 }
  0x34   : > { %297 = vmatpush.msra.mxu2 %v224_v43  ;;  %339 = vmatpush.msra.mxu3 %v192_v42 }
  0x35   : > { %277 = vmatpush.msra.mxu1 %v208_v44  ;;  %258 = vmatpush.msra.mxu0 %v191_v45 }
  0x36   : > { %298 = vmatpush.msra.mxu2 %v223_v46  ;;  %259 = vmatmul.f32.vlgmr.msra.gmra.mxu0 %v186_v49 }
  0x37   : > { %299 = vmatmul.f32.vlgmr.msra.gmra.mxu2 %v509_v47  ;;  %345 = vmatpush.msrb.mxu0 %v763_v3 }
  0x38   : > { %278 = vmatpush.msra.mxu1 %v207_v48  ;;  %340 = vmatpush.msra.mxu3 %v191_v45 }
  0x39   : > { %346 = vmatpush.msrb.mxu0 %v768_v6  ;;  %279 = vmatmul.f32.vlgmr.msra.gmra.mxu1 %v508_v50 }
  0x3a   : > { %365 = vmatpush.msrb.mxu1 %v760_v1  ;;  %341 = vmatmul.f32.vlgmr.msra.gmra.mxu3 %v508_v50 }
  0x3b   : > { %347 = vmatpush.msrb.mxu0 %v773_v8 }
  0x3c   : > { %366 = vmatpush.msrb.mxu1 %v765_v4 }
  0x3d   : > { %348 = vmatpush.msrb.mxu0 %v779_v11 }
  0x3e   : > { %367 = vmatpush.msrb.mxu1 %v770_v7 }
  0x3f   : > { %349 = vmatpush.msrb.mxu0 %v785_v14 }
  0x40   : > { %368 = vmatpush.msrb.mxu1 %v776_v10 }
  0x41   : > { %350 = vmatpush.msrb.mxu0 %v791_v17 }
  0x42   : > { %369 = vmatpush.msrb.mxu1 %v782_v13 }
  0x43   : > { %351 = vmatpush.msrb.mxu0 %v797_v20 }
  0x44   : > { %370 = vmatpush.msrb.mxu1 %v788_v16 }
  0x45   : > { %352 = vmatpush.msrb.mxu0 %v803_v23 }
  0x46   : > { %371 = vmatpush.msrb.mxu1 %v794_v19 }
  0x47   : > { %353 = vmatpush.msrb.mxu0 %v810_v26 }
  0x48   : > { %372 = vmatpush.msrb.mxu1 %v800_v22 }
  0x49   : > { %354 = vmatpush.msrb.mxu0 %v816_v29 }
  0x4a   : > { %373 = vmatpush.msrb.mxu1 %v806_v25 }
  0x4b   : > { %355 = vmatpush.msrb.mxu0 %v827_v32 }
  0x4c   : > { %374 = vmatpush.msrb.mxu1 %v813_v28 }
  0x4d   : > { %356 = vmatpush.msrb.mxu0 %v833_v35 }
  0x4e   : > { %375 = vmatpush.msrb.mxu1 %v819_v31 }
  0x4f   : > { %357 = vmatpush.msrb.mxu0 %v210_v38 }
  0x50   : > { %376 = vmatpush.msrb.mxu1 %v830_v34 }
  0x51   : > { %358 = vmatpush.msrb.mxu0 %v209_v41 }
  0x52   : > { %377 = vmatpush.msrb.mxu1 %v836_v37 }
  0x53   : > { %359 = vmatpush.msrb.mxu0 %v208_v44 }
  0x54   : > { %378 = vmatpush.msrb.mxu1 %v225_v40 }
  0x55   : > { %360 = vmatpush.msrb.mxu0 %v207_v48 }
  0x56   : > { %379 = vmatpush.msrb.mxu1 %v224_v43  ;;  %361 = vmatmul.f32.vlgmr.msrb.gmra.mxu0 %v509_v47 }
  0x58   : > { %380 = vmatpush.msrb.mxu1 %v223_v46 }
  0x59   : > { %381 = vmatmul.f32.vlgmr.msrb.gmra.mxu1 %v511_v51 }
  0xb3   : > { %v260_v53 = vpop.f32.mrf.mxu0 }
  0xb4   : > { %v261_v54 = vadd.f32 %v571_v52, %v260_v53 }
  0xb6   : > { %v280_v55 = vpop.f32.mrf.mxu1 }
  0xb7   : > { %v281_v56 = vadd.f32 %v280_v55, %v261_v54 }
  0xba   : > { %v300_v57 = vpop.f32.mrf.mxu2 }
  0xbb   : > { %v301_v58 = vadd.f32 %v300_v57, %v281_v56 }
  0xbd   : > { %v510_v59 = vmul.f32 -1.442695, %v301_v58  ;;  %v342_v60 = vpop.f32.mrf.mxu3 }
  0xbe   : > { %v343_v62 = vadd.f32 %v571_v52, %v342_v60 }
  0xbf   : > { %572 = vpow2.f32 %v510_v59 }
  0xc5   : > { %v573_v61 = vpop.eup %572 }
  0xc6   : > { %v306_v63 = vadd.f32 1.0, %v573_v61 }
  0xc8   : > { %574 = vrcp.f32 %v306_v63  ;;  %vm312_vm0 = vweird.f32 %v306_v63  ;;  %v316_v12 = vand.u32 2147483647, %v306_v63  ;;  %v318_v13 = vand.u32 2147483648, %v306_v63 }
  0xca   : > { %vm317_vm3 = vcmp.eq.f32.partialorder %v316_v12, 8.507059e+37  ;;  %v319_v17 = vor.u32 1.1754944e-38, %v318_v13 }
  0xce   : > { %v575_v5 = vpop.eup %574 }
  0xcf   : > { %v308_v6 = vmul.f32 %v575_v5, %v306_v63  ;;  %vm313_vm1 = vweird.f32 %v575_v5 }
  0xd0   : > { %vm314_vm2 = vmor %vm312_vm0, %vm313_vm1 }
  0xd1   : > { %v309_v9 = vsub.f32 1.0, %v308_v6 }
  0xd3   : > { %v362_v0 = vpop.f32.mrf.mxu0  ;;  %v310_v10 = vmul.f32 %v575_v5, %v309_v9 }
  0xd4   : > { %v363_v1 = vadd.f32 %v362_v0, %v343_v62 }
  0xd5   : > { %v311_v14 = vadd.f32 %v575_v5, %v310_v10 }
  0xd6   : > { %v382_v2 = vpop.f32.mrf.mxu1 }
  0xd7   : > { %v383_v3 = vadd.f32 %v382_v2, %v363_v1  ;;  %v315_v19 = vsel %vm314_vm2, %v575_v5, %v311_v14 }
  0xd8   : > { %v320_v23 = vsel %vm317_vm3, %v319_v17, %v315_v19 }
  0xd9   : > { %v512_v4 = vmul.f32 -1.442695, %v383_v3  ;;  %v322_v27 = vmul.f32 %v320_v23, %v301_v58 }
  0xdb   : > { %576 = vpow2.f32 %v512_v4 }
  0xe1   : > { %v577_v7 = vpop.eup %576 }
  0xe2   : > { %v388_v8 = vadd.f32 1.0, %v577_v7 }
  0xe4   : > { %578 = vrcp.f32 %v388_v8  ;;  %v400_v18 = vand.u32 2147483648, %v388_v8  ;;  %v398_v21 = vand.u32 2147483647, %v388_v8  ;;  %vm394_vm5 = vweird.f32 %v388_v8 }
  0xe6   : > { %v401_v24 = vor.u32 1.1754944e-38, %v400_v18  ;;  %vm399_vm7 = vcmp.eq.f32.partialorder %v398_v21, 8.507059e+37 }
  0xea   : > { %v579_v11 = vpop.eup %578 }
  0xeb   : > { %v390_v15 = vmul.f32 %v579_v11, %v388_v8  ;;  %vm395_vm4 = vweird.f32 %v579_v11 }
  0xec   : > { %vm396_vm6 = vmor %vm394_vm5, %vm395_vm4 }
  0xed   : > { %v391_v16 = vsub.f32 1.0, %v390_v15 }
  0xef   : > { %v392_v20 = vmul.f32 %v579_v11, %v391_v16 }
  0xf1   : > { %v393_v22 = vadd.f32 %v579_v11, %v392_v20 }
  0xf3   : > { %v397_v25 = vsel %vm396_vm6, %v579_v11, %v393_v22 }
  0xf4   : > { %v402_v26 = vsel %vm399_vm7, %v401_v24, %v397_v25 }
  0xf5   : > { %v404_v28 = vmul.f32 %v402_v26, %v383_v3 }
  0xf7   : > { %v405_v29 = vmax.f32 %v322_v27, %v404_v28 }
  0xf9   : > { %407 = vrot.lane.b32.xlu0 %v405_v29, %s681_s11 }
 0x16b   : > { %v408_v30 = vpop.permute.xlu0 %407 }
 0x16c   : > { %v410_v31 = vmax.f32 %v405_v29, %v408_v30 }
 0x16e   : > { %412 = vst.msk [vmem:[%s180_s27] sm:$0xff] %vm411_vm8, %v410_v31 }
 0x16f   : > { %637 = shalt.err (!%p634_p8)
}
 0x170   : > { %522 = dma.vmem_to_hbm [thread:$0]  (%p740_p5), %s427_s28, 128, %s429_s29, %s414_s30  }
 0x171 PF: > { %p534_p9 = scmp.ge.s32.totalorder %s676_s15, 2  ;;  %s440_s10 = sand.u32 1, %s664_s12  }
 0x172   : > { %s441_s11 = scalar_lea.sflag [#allocation4], %s440_s10 }
 0x173   : > { %p529_p10 = pnand %p534_p9, %p744_p6 }
 0x175   : > { %p530_p11 = pneg %p529_p10 }
 0x177   : > { %659 = dma.done.wait (%p530_p11), %s441_s11, 128  }
 0x178   : > { %661 = vsyncadd (%p530_p11), %s441_s11, 4294967168  ;;  %p14_p12 = scmp.ge.s32.totalorder %s727_s18, 4   ;;  %s917_s12 = smov %s668_s13 }
 0x179   : > { %s918_s13 = smov %s672_s14  ;;  %s919_s14 = smov %s738_s21 }
 0x17a   : > { %s920_s15 = smov %s727_s18  ;;  %16 = sbr.rel (!%p14_p12) target bundleno = 4 (0x4), region = 75 }
 0x17f   :  { %447 = vsyncpa [#allocation3], 1 }
 0x180   :  { %449 = vsyncpa [#allocation3 + $0x1], 1 }
 0x181   :  { %450 = vsyncpa [#allocation4], 1 }
 0x182   :  { %452 = vsyncpa [#allocation4 + $0x1], 1 }

</bundles_post_ra>
